<compile_context>
chip_gen: v7x
topology: tpu7x:2x2x1
jax: 0.10.0
libtpu: 0.0.40
codegen_flags: <defaults>
</compile_context>

<pallas_src>
import functools

import jax
import jax.numpy as jnp
from jax.experimental import pallas as pl
from jax.experimental.pallas import tpu as pltpu


def _round_up(x: int, m: int) -> int:
    return ((x + m - 1) // m) * m


def _select_tiles(n_pad: int, d_pad: int, itemsize: int, budget_bytes: int):
    """Pick (TM, TN): 128-multiples dividing n_pad, asymmetric, VMEM-budgeted."""
    k = n_pad // 128
    divisors = [128 * m for m in range(1, k + 1) if k % m == 0]

    def footprint(tm, tn):
        # double-buffered input blocks + f32 gram tile + temp + rowmax block
        return (2 * (tm + tn) * d_pad * itemsize) + 4 * (2 * tm * tn + 2 * tm)

    # >=2 parallel row tiles when possible (v7x megacore), TM capped at 512.
    tm_cap = max(128, min(512, n_pad // 2))
    tm_cands = [t for t in divisors if t <= tm_cap and footprint(t, 128) <= budget_bytes]
    tm = max(tm_cands) if tm_cands else 128
    tn_cands = [t for t in divisors if footprint(tm, t) <= budget_bytes]
    tn = max(tn_cands) if tn_cands else 128
    return tm, tn, footprint(tm, tn)


def _separation_kernel(a_ref, b_ref, rowmax_ref, *, tm: int, tn: int,
                       n_valid: int, n_pad: int):
    i = pl.program_id(0)           # row-tile index ("parallel")
    j = pl.program_id(1)           # col-tile index ("arbitrary" reduction axis)
    nj = pl.num_programs(1)
    has_pad = n_pad != n_valid     # trace-time Python bool

    @pl.when(j == 0)
    def _init():
        rowmax_ref[...] = jnp.full_like(rowmax_ref, -jnp.inf)

    # (TM, D) x (TN, D) contracted on the last (lane) dim -> (TM, TN) gram tile
    # straight into the MXU with f32 accumulation; no relayout of b.
    g = jax.lax.dot_general(
        a_ref[...], b_ref[...],
        dimension_numbers=(((1,), (1,)), ((), ())),
        preferred_element_type=jnp.float32,
    )

    row0 = i * tm
    col0 = j * tn

    # Only tiles whose row/col ranges overlap contain diagonal entries; only the
    # last column tile can contain padded (fake) columns.  Everything else takes
    # the mask-free fast branch (no iotas / compares / selects).
    needs_fixup = jnp.logical_and(row0 < col0 + tn, col0 < row0 + tm)
    if has_pad:
        needs_fixup = jnp.logical_or(needs_fixup, j == nj - 1)

    @pl.when(needs_fixup)
    def _masked_update():
        r = jax.lax.broadcasted_iota(jnp.int32, (tm, tn), 0) + row0
        c = jax.lax.broadcasted_iota(jnp.int32, (tm, tn), 1) + col0
        gm = jnp.where(r == c, g - 2.0, g)                 # fused "- 2 * eye"
        if has_pad:
            gm = jnp.where(c >= n_valid, -jnp.inf, gm)     # fake cols never win
        rowmax_ref[...] = jnp.maximum(rowmax_ref[...],
                                      jnp.max(gm, axis=1, keepdims=True))

    @pl.when(jnp.logical_not(needs_fixup))
    def _plain_update():
        rowmax_ref[...] = jnp.maximum(rowmax_ref[...],
                                      jnp.max(g, axis=1, keepdims=True))

    if has_pad:
        # Zero the row-maxes of padded (fake) rows (they live only in the last
        # row tile) so the wrapper can just sum the whole output and divide by N.
        @pl.when(jnp.logical_and(j == nj - 1, i == pl.num_programs(0) - 1))
        def _zero_pad_rows():
            rows = row0 + jax.lax.broadcasted_iota(jnp.int32, (tm, 1), 0)
            rowmax_ref[...] = jnp.where(rows < n_valid, rowmax_ref[...], 0.0)


def separation_loss(protos: jax.Array, *,
                    vmem_budget_bytes: int = 28 * 1024 * 1024,
                    compute_dtype=None) -> jax.Array:
    """Pallas TPU SeparationLoss: mean_i max_j (protos @ protos.T - 2I)[i, j].

    protos: (N_prototypes, Embedding_dim), any float dtype.  Returns f32 scalar.
    compute_dtype: optionally cast operands (e.g. jnp.bfloat16 on v6e/v7x) —
    MXU f32 accumulation is kept either way.
    """
    n, d = protos.shape
    p = protos if compute_dtype is None else protos.astype(compute_dtype)

    n_pad = _round_up(n, 128)      # lane-aligned gram / sublane-aligned rows
    d_pad = _round_up(d, 128)      # lane-aligned contraction dim; zero-pad is exact
    itemsize = jnp.dtype(p.dtype).itemsize
    tm, tn, fp = _select_tiles(n_pad, d_pad, itemsize, vmem_budget_bytes)

    if (n_pad, d_pad) != (n, d):
        p = jnp.pad(p, ((0, n_pad - n), (0, d_pad - d)))

    grid = (n_pad // tm, n_pad // tn)
    kernel = functools.partial(_separation_kernel, tm=tm, tn=tn,
                               n_valid=n, n_pad=n_pad)

    row_max = pl.pallas_call(
        kernel,
        out_shape=jax.ShapeDtypeStruct((n_pad, 1), jnp.float32),
        grid=grid,
        in_specs=[
            pl.BlockSpec((tm, d_pad), lambda i, j: (i, 0)),   # row block of protos
            pl.BlockSpec((tn, d_pad), lambda i, j: (j, 0)),   # col block of protos
        ],
        out_specs=pl.BlockSpec((tm, 1), lambda i, j: (i, 0)),
        compiler_params=pltpu.CompilerParams(
            dimension_semantics=("parallel", "arbitrary"),
            vmem_limit_bytes=int(min(fp + (12 << 20), 48 << 20)),
        ),
    )(p, p)

    # Padded rows were zeroed in-kernel -> mean over the N valid rows is a plain
    # O(n_pad) sum / N (no dynamic slice, tiny epilogue).
    return jnp.sum(row_max) / n


def _reference(protos: jax.Array) -> jax.Array:
    pf = protos.astype(jnp.float32)
    m = pf @ pf.T - 2.0 * jnp.eye(pf.shape[0], dtype=jnp.float32)
    return jnp.mean(jnp.max(m, axis=1))


if __name__ == "__main__":
    key = jax.random.PRNGKey(0)

    # Shapes implied by the module: (N_prototypes, Embedding_dim).
    n_protos, emb_dim = 8, 32
    protos = jax.random.normal(key, (n_protos, emb_dim), dtype=jnp.float32)
    # Prototypes live on the hypersphere in the original usage.
    protos = protos / jnp.linalg.norm(protos, axis=1, keepdims=True)

    loss = jax.block_until_ready(separation_loss(protos))
    ref = jax.block_until_ready(_reference(protos))
    assert jnp.allclose(loss, ref, atol=1e-4, rtol=1e-4), (loss, ref)

    # Non-128-aligned shape: exercises padded columns / rows inside one tile.
    k2, k3 = jax.random.split(jax.random.PRNGKey(1))
    protos2 = jax.random.normal(k2, (37, 48), dtype=jnp.float32)
    protos2 = protos2 / jnp.linalg.norm(protos2, axis=1, keepdims=True)
    loss2 = jax.block_until_ready(separation_loss(protos2))
    ref2 = jax.block_until_ready(_reference(protos2))
    assert jnp.allclose(loss2, ref2, atol=1e-4, rtol=1e-4), (loss2, ref2)

    # Tiny VMEM budget forces a (3, 3) grid: multiple row/col tiles, off-diagonal
    # mask-free branch, last-column-tile padding mask, padded-row zeroing,
    # running-max accumulation across the reduction axis.
    protos3 = jax.random.normal(k3, (300, 200), dtype=jnp.float32)
    protos3 = protos3 / jnp.linalg.norm(protos3, axis=1, keepdims=True)
    loss3 = jax.block_until_ready(
        separation_loss(protos3, vmem_budget_bytes=1 << 20))
    ref3 = jax.block_until_ready(_reference(protos3))
    assert jnp.allclose(loss3, ref3, atol=1e-4, rtol=1e-4), (loss3, ref3)

    print("KERNEL_OK")
</pallas_src>

<mosaic_0001>
module attributes {stable_mosaic.version = 11 : i64} {
  func.func @_separation_kernel(%arg0: i32, %arg1: i32, %arg2: memref<128x128xf32, #tpu.memory_space<vmem>>, %arg3: memref<128x128xf32, #tpu.memory_space<vmem>>, %arg4: memref<128x1xf32, #tpu.memory_space<vmem>>) attributes {dimension_semantics = [#tpu.dimension_semantics<parallel>, #tpu.dimension_semantics<arbitrary>], iteration_bounds = array<i64: 1, 1>, scalar_prefetch = 0 : i64, scratch_operands = 0 : i64, tpu.core_type = #tpu.core_type<tc>, window_params = [{transform_indices = @transform_0, window_bounds = array<i64: 128, 128>}, {transform_indices = @transform_1, window_bounds = array<i64: 128, 128>}, {transform_indices = @transform_2, window_bounds = array<i64: 128, 1>}]} {
    %c0_i32 = arith.constant 0 : i32
    %0 = arith.cmpi eq, %arg1, %c0_i32 : i32
    %1 = arith.extui %0 : i1 to i32
    %c0_i32_0 = arith.constant 0 : i32
    %2 = arith.cmpi ne, %1, %c0_i32_0 : i32
    scf.if %2 {
      %cst_13 = arith.constant 0xFF800000 : f32
      %25 = vector.broadcast %cst_13 : f32 to vector<128x1xf32>
      %c0_14 = arith.constant 0 : index
      %c0_15 = arith.constant 0 : index
      %26 = vector.load %arg4[%c0_14, %c0_15] : memref<128x1xf32, #tpu.memory_space<vmem>>, vector<128x1xf32>
      tpu.vector_store %arg4[%c0_14, %c0_15], %25 {strides = array<i32>} : memref<128x1xf32, #tpu.memory_space<vmem>>, vector<128x1xf32>,
    } else {
    }
    %c0 = arith.constant 0 : index
    %c0_1 = arith.constant 0 : index
    %3 = vector.load %arg2[%c0, %c0_1] : memref<128x128xf32, #tpu.memory_space<vmem>>, vector<128x128xf32>
    %c0_2 = arith.constant 0 : index
    %c0_3 = arith.constant 0 : index
    %4 = vector.load %arg3[%c0_2, %c0_3] : memref<128x128xf32, #tpu.memory_space<vmem>>, vector<128x128xf32>
    %cst = arith.constant dense<0.000000e+00> : vector<128x128xf32>
    %5 = tpu.matmul %3, %4, %cst {dimension_numbers = #tpu.dot_dimension_numbers<[1], [1], [0], [0], [0, 0, 1, 0], [], []>} : vector<128x128xf32>, vector<128x128xf32>, vector<128x128xf32> -> vector<128x128xf32>
    %c128_i32 = arith.constant 128 : i32
    %6 = arith.muli %arg0, %c128_i32 : i32
    %c128_i32_4 = arith.constant 128 : i32
    %7 = arith.muli %arg1, %c128_i32_4 : i32
    %c128_i32_5 = arith.constant 128 : i32
    %8 = arith.addi %7, %c128_i32_5 : i32
    %9 = arith.cmpi slt, %6, %8 : i32
    %c128_i32_6 = arith.constant 128 : i32
    %10 = arith.addi %6, %c128_i32_6 : i32
    %11 = arith.cmpi slt, %7, %10 : i32
    %12 = arith.andi %9, %11 : i1
    %c0_i32_7 = arith.constant 0 : i32
    %13 = arith.cmpi eq, %arg1, %c0_i32_7 : i32
    %14 = arith.ori %12, %13 : i1
    %15 = arith.extui %14 : i1 to i32
    %c0_i32_8 = arith.constant 0 : i32
    %16 = arith.cmpi ne, %15, %c0_i32_8 : i32
    scf.if %16 {
      %25 = tpu.iota {dimensions = array<i32: 0>} : vector<128x128xi32>
      %26 = vector.broadcast %6 : i32 to vector<128x128xi32>
      %27 = arith.addi %25, %26 : vector<128x128xi32>
      %28 = tpu.iota {dimensions = array<i32: 1>} : vector<128x128xi32>
      %29 = vector.broadcast %7 : i32 to vector<128x128xi32>
      %30 = arith.addi %28, %29 : vector<128x128xi32>
      %31 = arith.cmpi eq, %27, %30 : vector<128x128xi32>
      %cst_13 = arith.constant 2.000000e+00 : f32
      %32 = vector.broadcast %cst_13 : f32 to vector<128x128xf32>
      %33 = arith.subf %5, %32 : vector<128x128xf32>
      %34 = arith.select %31, %33, %5 : vector<128x128xi1>, vector<128x128xf32>
      %c8_i32 = arith.constant 8 : i32
      %35 = vector.broadcast %c8_i32 : i32 to vector<128x128xi32>
      %36 = arith.cmpi sge, %30, %35 : vector<128x128xi32>
      %cst_14 = arith.constant 0xFF800000 : f32
      %37 = vector.broadcast %cst_14 : f32 to vector<128x128xf32>
      %38 = arith.select %36, %37, %34 : vector<128x128xi1>, vector<128x128xf32>
      %c0_15 = arith.constant 0 : index
      %c0_16 = arith.constant 0 : index
      %39 = vector.load %arg4[%c0_15, %c0_16] : memref<128x1xf32, #tpu.memory_space<vmem>>, vector<128x1xf32>
      %cst_17 = arith.constant dense<0xFF800000> : vector<128xf32>
      %40 = vector.multi_reduction <maximumf>, %38, %cst_17 [1] : vector<128x128xf32> to vector<128xf32>
      %41 = vector.shape_cast %40 : vector<128xf32> to vector<128x1xf32>
      %42 = arith.maximumf %39, %41 : vector<128x1xf32>
      %c0_18 = arith.constant 0 : index
      %c0_19 = arith.constant 0 : index
      %43 = vector.load %arg4[%c0_18, %c0_19] : memref<128x1xf32, #tpu.memory_space<vmem>>, vector<128x1xf32>
      tpu.vector_store %arg4[%c0_18, %c0_19], %42 {strides = array<i32>} : memref<128x1xf32, #tpu.memory_space<vmem>>, vector<128x1xf32>,
    } else {
    }
    %true = arith.constant true
    %17 = arith.xori %14, %true : i1
    %18 = arith.extui %17 : i1 to i32
    %c0_i32_9 = arith.constant 0 : i32
    %19 = arith.cmpi ne, %18, %c0_i32_9 : i32
    scf.if %19 {
      %c0_13 = arith.constant 0 : index
      %c0_14 = arith.constant 0 : index
      %25 = vector.load %arg4[%c0_13, %c0_14] : memref<128x1xf32, #tpu.memory_space<vmem>>, vector<128x1xf32>
      %cst_15 = arith.constant dense<0xFF800000> : vector<128xf32>
      %26 = vector.multi_reduction <maximumf>, %5, %cst_15 [1] : vector<128x128xf32> to vector<128xf32>
      %27 = vector.shape_cast %26 : vector<128xf32> to vector<128x1xf32>
      %28 = arith.maximumf %25, %27 : vector<128x1xf32>
      %c0_16 = arith.constant 0 : index
      %c0_17 = arith.constant 0 : index
      %29 = vector.load %arg4[%c0_16, %c0_17] : memref<128x1xf32, #tpu.memory_space<vmem>>, vector<128x1xf32>
      tpu.vector_store %arg4[%c0_16, %c0_17], %28 {strides = array<i32>} : memref<128x1xf32, #tpu.memory_space<vmem>>, vector<128x1xf32>,
    } else {
    }
    %c0_i32_10 = arith.constant 0 : i32
    %20 = arith.cmpi eq, %arg1, %c0_i32_10 : i32
    %c0_i32_11 = arith.constant 0 : i32
    %21 = arith.cmpi eq, %arg0, %c0_i32_11 : i32
    %22 = arith.andi %20, %21 : i1
    %23 = arith.extui %22 : i1 to i32
    %c0_i32_12 = arith.constant 0 : i32
    %24 = arith.cmpi ne, %23, %c0_i32_12 : i32
    scf.if %24 {
      %25 = tpu.iota {dimensions = array<i32: 0>} : vector<128x1xi32>
      %26 = vector.broadcast %6 : i32 to vector<128x1xi32>
      %27 = arith.addi %26, %25 : vector<128x1xi32>
      %c8_i32 = arith.constant 8 : i32
      %28 = vector.broadcast %c8_i32 : i32 to vector<128x1xi32>
      %29 = arith.cmpi slt, %27, %28 : vector<128x1xi32>
      %c0_13 = arith.constant 0 : index
      %c0_14 = arith.constant 0 : index
      %30 = vector.load %arg4[%c0_13, %c0_14] : memref<128x1xf32, #tpu.memory_space<vmem>>, vector<128x1xf32>
      %cst_15 = arith.constant 0.000000e+00 : f32
      %31 = vector.broadcast %cst_15 : f32 to vector<128x1xf32>
      %32 = arith.select %29, %30, %31 : vector<128x1xi1>, vector<128x1xf32>
      %c0_16 = arith.constant 0 : index
      %c0_17 = arith.constant 0 : index
      %33 = vector.load %arg4[%c0_16, %c0_17] : memref<128x1xf32, #tpu.memory_space<vmem>>, vector<128x1xf32>
      tpu.vector_store %arg4[%c0_16, %c0_17], %32 {strides = array<i32>} : memref<128x1xf32, #tpu.memory_space<vmem>>, vector<128x1xf32>,
    } else {
    }
    return
  }
  func.func @transform_0(%arg0: i32, %arg1: i32) -> (i32, i32) {
    %c0_i32 = arith.constant 0 : i32
    %c0_i32_0 = arith.constant 0 : i32
    return %arg0, %c0_i32 : i32, i32
  }
  func.func @transform_1(%arg0: i32, %arg1: i32) -> (i32, i32) {
    %c0_i32 = arith.constant 0 : i32
    %c0_i32_0 = arith.constant 0 : i32
    return %arg1, %c0_i32 : i32, i32
  }
  func.func @transform_2(%arg0: i32, %arg1: i32) -> (i32, i32) {
    %c0_i32 = arith.constant 0 : i32
    %c0_i32_0 = arith.constant 0 : i32
    return %arg0, %c0_i32 : i32, i32
  }
}

</mosaic_0001>

<bundles_post_ra>
// kernel: tpu_custom_call.1
= control target key start
LH: loop header
LB: loop body
LE: loop exit
PB: predicated region body
PF: predicated region fallthrough
CT: control target
= control target key end

     0   :  { %7 = vsyncpa [#allocation3], 0  ;;  %s1208_s0 = inlined_call_operand.hbm [shape: f32[128,128], index: 0, kind: input, shape index: {}]   ;;  %s1209_s1 = inlined_call_operand.hbm [shape: f32[128,128], index: 1, kind: input, shape index: {}]   ;;  %s1210_s2 = inlined_call_operand.vmem [shape: f32[128,1], index: 2, kind: output, shape index: {}]  }
   0x1   :  { %8 = vsyncpa [#allocation5], 0  ;;  %s833_s9 = smov [#allocation2]   ;;  %s785_s13 = scalar_lea.hbm %s1208_s0, 2048 }
   0x2   :  { %s14_s10 = sshll.u32 %s833_s9, 4  ;;  %p786_p0 = scmp.ne.s32.totalorder %s1208_s0, %s785_s13  ;;  %s15_s10 = int_to_ptr.vmem [resolvable:$true] %s14_s10 }
   0x3   :  { %p789_p1 = scmp.lt.u32.totalorder %s785_s13, %s1208_s0 }
   0x5   :  { %p791_p2 = pnand %p789_p1, %p786_p0 }
   0x7   :  { %794 = shalt.err (!%p791_p2)
}
   0x8   :  { %s795_s18 = scalar_lea.vmem %s15_s10, 2048  ;;  %p800_p4 = scmp.lt.s32.totalorder %s15_s10, %s15_s10 }
   0x9   :  { %p796_p3 = scmp.ne.s32.totalorder %s15_s10, %s795_s18  ;;  %p801_p5 = scmp.lt.s32.totalorder %s795_s18, %s795_s18 }
   0xb   :  { %p802_p6 = por %p801_p5, %p800_p4 }
   0xd   :  { %p803_p7 = pnand %p802_p6, %p796_p3 }
   0xf   :  { %806 = shalt.err (!%p803_p7)
}
  0x10   :  { %s834_s19 = smov 128   ;;  %s835_s20 = smov 8  }
  0x11   :  { %20 = dma.hbm_to_vmem [thread:$0]  %s1208_s0, 2048, %s15_s10, [#allocation3], %s834_s19, %s834_s19, %s835_s20  }
  0x12   :  { %s836_s23 = smov [#allocation4]   ;;  %s807_s27 = scalar_lea.hbm %s1209_s1, 2048 }
  0x13   :  { %s26_s24 = sshll.u32 %s836_s23, 4  ;;  %p808_p8 = scmp.ne.s32.totalorder %s1209_s1, %s807_s27  ;;  %s27_s24 = int_to_ptr.vmem [resolvable:$true] %s26_s24 }
  0x14   :  { %p811_p9 = scmp.lt.u32.totalorder %s807_s27, %s1209_s1 }
  0x16   :  { %p813_p10 = pnand %p811_p9, %p808_p8 }
  0x18   :  { %816 = shalt.err (!%p813_p10)
}
  0x19   :  { %s817_s4 = scalar_lea.vmem %s27_s24, 2048  ;;  %p822_p12 = scmp.lt.s32.totalorder %s27_s24, %s27_s24 }
  0x1a   :  { %p818_p11 = scmp.ne.s32.totalorder %s27_s24, %s817_s4  ;;  %p823_p13 = scmp.lt.s32.totalorder %s817_s4, %s817_s4 }
  0x1c   :  { %p824_p0 = por %p823_p13, %p822_p12 }
  0x1e   :  { %p825_p1 = pnand %p824_p0, %p818_p11 }
  0x20   :  { %828 = shalt.err (!%p825_p1)
}
  0x21   :  { %32 = dma.hbm_to_vmem [thread:$0]  %s1209_s1, 2048, %s27_s24, [#allocation5], %s834_s19, %s834_s19, %s835_s20  }
  0x22   :  { %829 = dma.done.wait [#allocation3], 2048  }
  0x23   :  { %830 = vsyncadd [#allocation3], 4294965248 }
  0x24   :  { %831 = dma.done.wait [#allocation5], 2048  }
  0x25   :  { %832 = vsyncadd [#allocation5], 4294965248  ;;  %v76_v0 = vld [vmem:[#allocation4] sm:$0xff]  ;;  %v77_v1 = vld [vmem:[#allocation4 + $0x8] sm:$0xff]  ;;  %vm43_vm0 = vcmask 7168   ;;  %v837_v40 = vmov -inf   ;;  %v249_v41 = vlaneseq }
  0x26   :  { %v78_v2 = vld [vmem:[#allocation4 + $0x10] sm:$0xff]  ;;  %v731_v3 = vpack.c.bf16 %v77_v1, %v76_v0  ;;  %v79_v4 = vld [vmem:[#allocation4 + $0x18] sm:$0xff]  ;;  %v60_v6 = vld [vmem:[#allocation2] sm:$0xff]  ;;  %53 = vst.msk [vmem:[%s1210_s2 + $0x48] sm:$0xff] %vm43_vm0, %v837_v40 }
  0x27   :  { %v735_v5 = vpack.c.bf16 %v79_v4, %v78_v2  ;;  %v68_v7 = vld [vmem:[#allocation2 + $0x40] sm:$0xff]  ;;  %v81_v9 = vld [vmem:[#allocation4 + $0x28] sm:$0xff]  ;;  %707 = vmatprep.mubr.f32.mxu0 %v60_v6  ;;  %v82_v11 = vld [vmem:[#allocation4 + $0x30] sm:$0xff]  ;;  %44 = vst.msk [vmem:[%s1210_s2] sm:$0xff] %vm43_vm0, %v837_v40  ;;  %v942_v42 = vshrl.u32 %v249_v41, 7  ;;  %v945_v44 = vand.u32 127, %v249_v41 }
  0x28   :  { %732 = vmatprep.subr.bf16.mxu0 %v731_v3  ;;  %763 = vmatprep.subr.bf16.mxu1 %v731_v3  ;;  %v80_v8 = vld [vmem:[#allocation4 + $0x20] sm:$0xff]  ;;  %v83_v12 = vld [vmem:[#allocation4 + $0x38] sm:$0xff]  ;;  %v85_v15 = vld [vmem:[#allocation4 + $0x48] sm:$0xff]  ;;  %45 = vst.msk [vmem:[%s1210_s2 + $0x8] sm:$0xff] %vm43_vm0, %v837_v40 }
  0x29   :  { %734 = vmatpush3.bf16.xpose.msra.mxu0 %v731_v3  ;;  %771 = vmatpush3.bf16.xpose.msra.mxu1 %v731_v3  ;;  %v739_v10 = vpack.c.bf16 %v81_v9, %v80_v8  ;;  %v743_v13 = vpack.c.bf16 %v83_v12, %v82_v11  ;;  %v84_v14 = vld [vmem:[#allocation4 + $0x40] sm:$0xff]  ;;  %v86_v17 = vld [vmem:[#allocation4 + $0x50] sm:$0xff]  ;;  %v87_v18 = vld [vmem:[#allocation4 + $0x58] sm:$0xff]  ;;  %46 = vst.msk [vmem:[%s1210_s2 + $0x10] sm:$0xff] %vm43_vm0, %v837_v40  ;;  %v259_v43 = vadd.s32 72, %v942_v42  ;;  %v251_v45 = vadd.s32 8, %v942_v42 }
  0x2a   :  { %736 = vmatprep.subr.bf16.mxu0 %v735_v5  ;;  %764 = vmatprep.subr.bf16.mxu1 %v735_v5  ;;  %v747_v16 = vpack.c.bf16 %v85_v15, %v84_v14  ;;  %v751_v19 = vpack.c.bf16 %v87_v18, %v86_v17  ;;  %v88_v20 = vld [vmem:[#allocation4 + $0x60] sm:$0xff]  ;;  %v89_v21 = vld [vmem:[#allocation4 + $0x68] sm:$0xff]  ;;  %v90_v23 = vld [vmem:[#allocation4 + $0x70] sm:$0xff]  ;;  %47 = vst.msk [vmem:[%s1210_s2 + $0x18] sm:$0xff] %vm43_vm0, %v837_v40  ;;  %v253_v48 = vadd.s32 24, %v942_v42  ;;  %vm335_vm3 = vcmp.ge.s32.totalorder %v945_v44, 8 }
  0x2b   :  { %719 = vmatprep.mubr.f32.mxu1 %v68_v7  ;;  %v755_v22 = vpack.c.bf16 %v89_v21, %v88_v20  ;;  %v91_v24 = vld [vmem:[#allocation4 + $0x78] sm:$0xff]  ;;  %v61_v26 = vld [vmem:[#allocation2 + $0x8] sm:$0xff]  ;;  %v62_v28 = vld [vmem:[#allocation2 + $0x10] sm:$0xff]  ;;  %48 = vst.msk [vmem:[%s1210_s2 + $0x20] sm:$0xff] %vm43_vm0, %v837_v40  ;;  %vm296_vm1 = vcmp.eq.s32.totalorder %v259_v43, %v945_v44  ;;  %vm288_vm2 = vcmp.eq.s32.totalorder %v251_v45, %v945_v44  ;;  %v258_v54 = vadd.s32 64, %v942_v42 }
  0x2c   :  { %v759_v25 = vpack.c.bf16 %v91_v24, %v90_v23  ;;  %v69_v27 = vld [vmem:[#allocation2 + $0x48] sm:$0xff]  ;;  %v70_v29 = vld [vmem:[#allocation2 + $0x50] sm:$0xff]  ;;  %v63_v30 = vld [vmem:[#allocation2 + $0x18] sm:$0xff]  ;;  %49 = vst.msk [vmem:[%s1210_s2 + $0x28] sm:$0xff] %vm43_vm0, %v837_v40  ;;  %vm287_vm4 = vcmp.eq.s32.totalorder %v942_v42, %v945_v44  ;;  %v261_v55 = vadd.s32 88, %v942_v42  ;;  %vm290_vm5 = vcmp.eq.s32.totalorder %v253_v48, %v945_v44 }
  0x2d   :  { %v71_v31 = vld [vmem:[#allocation2 + $0x58] sm:$0xff]  ;;  %v64_v32 = vld [vmem:[#allocation2 + $0x20] sm:$0xff]  ;;  %v65_v34 = vld [vmem:[#allocation2 + $0x28] sm:$0xff]  ;;  %50 = vst.msk [vmem:[%s1210_s2 + $0x30] sm:$0xff] %vm43_vm0, %v837_v40  ;;  %vm295_vm6 = vcmp.eq.s32.totalorder %v258_v54, %v945_v44  ;;  %v260_v4 = vadd.s32 80, %v942_v42  ;;  %v255_v17 = vadd.s32 40, %v942_v42 }
  0x2e   :  { %v72_v33 = vld [vmem:[#allocation2 + $0x60] sm:$0xff]  ;;  %v73_v35 = vld [vmem:[#allocation2 + $0x68] sm:$0xff]  ;;  %v66_v36 = vld [vmem:[#allocation2 + $0x30] sm:$0xff]  ;;  %51 = vst.msk [vmem:[%s1210_s2 + $0x38] sm:$0xff] %vm43_vm0, %v837_v40  ;;  %vm298_vm7 = vcmp.eq.s32.totalorder %v261_v55, %v945_v44  ;;  %v254_v18 = vadd.s32 32, %v942_v42  ;;  %v264_v48 = vadd.s32 112, %v942_v42 }
  0x2f   :  { %v74_v37 = vld [vmem:[#allocation2 + $0x70] sm:$0xff]  ;;  %v67_v38 = vld [vmem:[#allocation2 + $0x38] sm:$0xff]  ;;  %52 = vst.msk [vmem:[%s1210_s2 + $0x40] sm:$0xff] %vm43_vm0, %v837_v40  ;;  %54 = vst.msk [vmem:[%s1210_s2 + $0x50] sm:$0xff] %vm43_vm0, %v837_v40  ;;  %vm297_vm8 = vcmp.eq.s32.totalorder %v260_v4, %v945_v44  ;;  %vm292_vm10 = vcmp.eq.s32.totalorder %v255_v17, %v945_v44 }
  0x30   :  { %v75_v39 = vld [vmem:[#allocation2 + $0x78] sm:$0xff]  ;;  %55 = vst.msk [vmem:[%s1210_s2 + $0x58] sm:$0xff] %vm43_vm0, %v837_v40  ;;  %56 = vst.msk [vmem:[%s1210_s2 + $0x60] sm:$0xff] %vm43_vm0, %v837_v40  ;;  %vm291_vm11 = vcmp.eq.s32.totalorder %v254_v18, %v945_v44 }
  0x31   :  { %738 = vmatpush3.bf16.xpose.msra.mxu0 %v735_v5  ;;  %772 = vmatpush3.bf16.xpose.msra.mxu1 %v735_v5  ;;  %57 = vst.msk [vmem:[%s1210_s2 + $0x68] sm:$0xff] %vm43_vm0, %v837_v40  ;;  %58 = vst.msk [vmem:[%s1210_s2 + $0x70] sm:$0xff] %vm43_vm0, %v837_v40  ;;  %v252_v5 = vadd.s32 16, %v942_v42 }
  0x32   :  { %740 = vmatprep.subr.bf16.mxu0 %v739_v10  ;;  %765 = vmatprep.subr.bf16.mxu1 %v739_v10  ;;  %59 = vst.msk [vmem:[%s1210_s2 + $0x78] sm:$0xff] %vm43_vm0, %v837_v40 }
  0x33   :  { %vm289_vm9 = vcmp.eq.s32.totalorder %v252_v5, %v945_v44 }
  0x39   :  { %742 = vmatpush3.bf16.xpose.msra.mxu0 %v739_v10  ;;  %773 = vmatpush3.bf16.xpose.msra.mxu1 %v739_v10 }
  0x3a   :  { %744 = vmatprep.subr.bf16.mxu0 %v743_v13  ;;  %766 = vmatprep.subr.bf16.mxu1 %v743_v13 }
  0x41   :  { %746 = vmatpush3.bf16.xpose.msra.mxu0 %v743_v13  ;;  %774 = vmatpush3.bf16.xpose.msra.mxu1 %v743_v13 }
  0x42   :  { %748 = vmatprep.subr.bf16.mxu0 %v747_v16  ;;  %767 = vmatprep.subr.bf16.mxu1 %v747_v16 }
  0x49   :  { %750 = vmatpush3.bf16.xpose.msra.mxu0 %v747_v16  ;;  %775 = vmatpush3.bf16.xpose.msra.mxu1 %v747_v16 }
  0x4a   :  { %752 = vmatprep.subr.bf16.mxu0 %v751_v19  ;;  %768 = vmatprep.subr.bf16.mxu1 %v751_v19 }
  0x51   :  { %754 = vmatpush3.bf16.xpose.msra.mxu0 %v751_v19  ;;  %776 = vmatpush3.bf16.xpose.msra.mxu1 %v751_v19 }
  0x52   :  { %756 = vmatprep.subr.bf16.mxu0 %v755_v22  ;;  %769 = vmatprep.subr.bf16.mxu1 %v755_v22 }
  0x59   :  { %758 = vmatpush3.bf16.xpose.msra.mxu0 %v755_v22  ;;  %777 = vmatpush3.bf16.xpose.msra.mxu1 %v755_v22 }
  0x5a   :  { %760 = vmatprep.subr.bf16.mxu0 %v759_v25  ;;  %770 = vmatprep.subr.bf16.mxu1 %v759_v25 }
  0x61   :  { %762 = vmatpush3.bf16.xpose.msra.mxu0 %v759_v25  ;;  %778 = vmatpush3.bf16.xpose.msra.mxu1 %v759_v25 }
  0x68   :  { %708 = vmatmul.mubr.f32.vlgmr.msra.gmra.mrb[0].mxu0 %v61_v26  ;;  %720 = vmatmul.mubr.f32.vlgmr.msra.gmra.mrb[0].mxu1 %v69_v27 }
  0x69   :  { %710 = vmatprep.mubr.f32.mxu0 %v62_v28  ;;  %722 = vmatprep.mubr.f32.mxu1 %v70_v29  ;;  %v263_v29 = vadd.s32 104, %v942_v42 }
  0x6b   :  { %vm300_vm12 = vcmp.eq.s32.totalorder %v263_v29, %v945_v44 }
  0x6c   :  { %711 = vmatmul.mubr.f32.gmra.mrb[2].mxu0 %v63_v30  ;;  %723 = vmatmul.mubr.f32.gmra.mrb[2].mxu1 %v71_v31  ;;  %v262_v30 = vadd.s32 96, %v942_v42 }
  0x6d   :  { %713 = vmatprep.mubr.f32.mxu0 %v64_v32  ;;  %725 = vmatprep.mubr.f32.mxu1 %v72_v33 }
  0x6e   :  { %vm299_vm13 = vcmp.eq.s32.totalorder %v262_v30, %v945_v44 }
  0x70   :  { %714 = vmatmul.mubr.f32.gmra.mrb[4].mxu0 %v65_v34  ;;  %726 = vmatmul.mubr.f32.gmra.mrb[4].mxu1 %v73_v35 }
  0x71   :  { %716 = vmatprep.mubr.f32.mxu0 %v66_v36  ;;  %728 = vmatprep.mubr.f32.mxu1 %v74_v37  ;;  %v257_v37 = vadd.s32 56, %v942_v42 }
  0x73   :  { %vm294_vm14 = vcmp.eq.s32.totalorder %v257_v37, %v945_v44 }
  0x74   :  { %717 = vmatmul.mubr.f32.gmra.mrb[6].mxu0 %v67_v38  ;;  %729 = vmatmul.mubr.f32.gmra.mrb[6].mxu1 %v75_v39  ;;  %v256_v38 = vadd.s32 48, %v942_v42 }
  0x76   :  { %vm293_vm15 = vcmp.eq.s32.totalorder %v256_v38, %v945_v44 }
 0x13b   :  { %v709_v46 = vpop.f32.mrb[0].mxu0  ;;  %v721_v47 = vpop.f32.mrb[0].mxu1 }
 0x13c   :  { %v628_v49 = vadd.f32 -2.0, %v709_v46  ;;  %v636_v50 = vadd.f32 -2.0, %v721_v47  ;;  %v158_v51 = vpop.f32.mrb[1].mxu0  ;;  %v198_v52 = vpop.f32.mrb[1].mxu1 }
 0x13d   :  { %v627_v53 = vadd.f32 -2.0, %v158_v51  ;;  %v635_v62 = vadd.f32 -2.0, %v198_v52 }
 0x13e   :  { %v328_v56 = vsel %vm296_vm1, %v636_v50, %v721_v47  ;;  %v320_v57 = vsel %vm288_vm2, %v628_v49, %v709_v46  ;;  %v265_v47 = vadd.s32 120, %v942_v42  ;;  %vm301_vm2 = vcmp.eq.s32.totalorder %v264_v48, %v945_v44 }
 0x13f   :  { %v712_v58 = vpop.f32.mrb[2].mxu0  ;;  %v345_v59 = vsel %vm335_vm3, -inf, %v328_v56  ;;  %v724_v60 = vpop.f32.mrb[2].mxu1  ;;  %v337_v61 = vsel %vm335_vm3, -inf, %v320_v57  ;;  %v319_v3 = vsel %vm287_vm4, %v627_v53, %v158_v51  ;;  %v327_v13 = vsel %vm295_vm6, %v635_v62, %v198_v52 }
 0x140   :  { %v630_v63 = vadd.f32 -2.0, %v712_v58  ;;  %386 = vmax.xlane.f32.xlu1 %v345_v59  ;;  %v638_v0 = vadd.f32 -2.0, %v724_v60  ;;  %370 = vmax.xlane.f32.xlu0 %v337_v61  ;;  %v168_v1 = vpop.f32.mrb[3].mxu0  ;;  %v208_v2 = vpop.f32.mrb[3].mxu1  ;;  %v336_v7 = vsel %vm335_vm3, -inf, %v319_v3  ;;  %v344_v19 = vsel %vm335_vm3, -inf, %v327_v13 }
 0x141   :  { %v629_v11 = vadd.f32 -2.0, %v168_v1  ;;  %v637_v12 = vadd.f32 -2.0, %v208_v2  ;;  %vm302_vm1 = vcmp.eq.s32.totalorder %v265_v47, %v945_v44  ;;  %v353_v61 = vld [vmem:[%s1210_s2 + $0x8] sm:$0xff]  ;;  %v355_v44 = vld [vmem:[%s1210_s2 + $0x18] sm:$0xff]  ;;  %v838_v3 = vmov 0.0  }
 0x142   :  { %v322_v6 = vsel %vm290_vm5, %v630_v63, %v712_v58  ;;  %v330_v14 = vsel %vm298_vm7, %v638_v0, %v724_v60  ;;  %v361_v60 = vld [vmem:[%s1210_s2 + $0x48] sm:$0xff] }
 0x143   :  { %v339_v8 = vsel %vm335_vm3, -inf, %v322_v6  ;;  %v715_v9 = vpop.f32.mrb[4].mxu0  ;;  %v727_v10 = vpop.f32.mrb[4].mxu1  ;;  %v347_v20 = vsel %vm335_vm3, -inf, %v330_v14  ;;  %v329_v25 = vsel %vm297_vm8, %v637_v12, %v208_v2  ;;  %v321_v26 = vsel %vm289_vm9, %v629_v11, %v168_v1  ;;  %v352_v2 = vld [vmem:[%s1210_s2] sm:$0xff]  ;;  %v362_v14 = vld [vmem:[%s1210_s2 + $0x50] sm:$0xff] }
 0x144   :  { %368 = vmax.xlane.f32.xlu0 %v336_v7  ;;  %374 = vmax.xlane.f32.xlu1 %v339_v8  ;;  %v178_v15 = vpop.f32.mrb[5].mxu0  ;;  %v218_v16 = vpop.f32.mrb[5].mxu1  ;;  %v632_v23 = vadd.f32 -2.0, %v715_v9  ;;  %v346_v31 = vsel %vm335_vm3, -inf, %v329_v25  ;;  %v338_v32 = vsel %vm335_vm3, -inf, %v321_v26  ;;  %v640_v33 = vadd.f32 -2.0, %v727_v10 }
 0x145   :  { %v631_v24 = vadd.f32 -2.0, %v178_v15  ;;  %v639_v34 = vadd.f32 -2.0, %v218_v16  ;;  %v360_v8 = vld [vmem:[%s1210_s2 + $0x40] sm:$0xff] }
 0x146   :  { %v324_v35 = vsel %vm292_vm10, %v632_v23, %v715_v9  ;;  %v332_v45 = vsel %vm300_vm12, %v640_v33, %v727_v10  ;;  %v363_v9 = vld [vmem:[%s1210_s2 + $0x58] sm:$0xff] }
 0x147   :  { %v718_v21 = vpop.f32.mrb[6].mxu0  ;;  %v730_v22 = vpop.f32.mrb[6].mxu1  ;;  %v323_v36 = vsel %vm291_vm11, %v631_v24, %v178_v15  ;;  %v341_v39 = vsel %vm335_vm3, -inf, %v324_v35  ;;  %v331_v46 = vsel %vm299_vm13, %v639_v34, %v218_v16  ;;  %v349_v49 = vsel %vm335_vm3, -inf, %v332_v45  ;;  %v354_v15 = vld [vmem:[%s1210_s2 + $0x10] sm:$0xff]  ;;  %v359_v33 = vld [vmem:[%s1210_s2 + $0x38] sm:$0xff] }
 0x148   :  { %384 = vmax.xlane.f32.xlu0 %v344_v19  ;;  %390 = vmax.xlane.f32.xlu1 %v347_v20  ;;  %v188_v27 = vpop.f32.mrb[7].mxu0  ;;  %v228_v28 = vpop.f32.mrb[7].mxu1  ;;  %v340_v40 = vsel %vm335_vm3, -inf, %v323_v36  ;;  %v634_v41 = vadd.f32 -2.0, %v718_v21  ;;  %v348_v50 = vsel %vm335_vm3, -inf, %v331_v46  ;;  %v642_v51 = vadd.f32 -2.0, %v730_v22 }
 0x149   :  { %v633_v43 = vadd.f32 -2.0, %v188_v27  ;;  %v641_v52 = vadd.f32 -2.0, %v228_v28  ;;  %v358_v34 = vld [vmem:[%s1210_s2 + $0x30] sm:$0xff] }
 0x14a   :  { %v326_v53 = vsel %vm294_vm14, %v634_v41, %v718_v21  ;;  %v334_v56 = vsel %vm302_vm1, %v642_v51, %v730_v22  ;;  %v357_v21 = vld [vmem:[%s1210_s2 + $0x28] sm:$0xff]  ;;  %v356_v22 = vld [vmem:[%s1210_s2 + $0x20] sm:$0xff] }
 0x14b   :  { %v325_v54 = vsel %vm293_vm15, %v633_v43, %v188_v27  ;;  %v343_v55 = vsel %vm335_vm3, -inf, %v326_v53  ;;  %v333_v57 = vsel %vm301_vm2, %v641_v52, %v228_v28  ;;  %v351_v58 = vsel %vm335_vm3, -inf, %v334_v56  ;;  %v365_v27 = vld [vmem:[%s1210_s2 + $0x68] sm:$0xff]  ;;  %v364_v28 = vld [vmem:[%s1210_s2 + $0x60] sm:$0xff] }
 0x14c   :  { %388 = vmax.xlane.f32.xlu0 %v346_v31  ;;  %372 = vmax.xlane.f32.xlu1 %v338_v32  ;;  %v342_v42 = vsel %vm335_vm3, -inf, %v325_v54  ;;  %v350_v59 = vsel %vm335_vm3, -inf, %v333_v57 }
 0x150   :  { %378 = vmax.xlane.f32.xlu1 %v341_v39  ;;  %376 = vmax.xlane.f32.xlu0 %v340_v40  ;;  %v367_v39 = vld [vmem:[%s1210_s2 + $0x78] sm:$0xff]  ;;  %v366_v40 = vld [vmem:[%s1210_s2 + $0x70] sm:$0xff] }
 0x154   :  { %394 = vmax.xlane.f32.xlu1 %v349_v49  ;;  %392 = vmax.xlane.f32.xlu0 %v348_v50 }
 0x158   :  { %382 = vmax.xlane.f32.xlu1 %v343_v55  ;;  %380 = vmax.xlane.f32.xlu0 %v342_v42 }
 0x15c   :  { %398 = vmax.xlane.f32.xlu1 %v351_v58  ;;  %396 = vmax.xlane.f32.xlu0 %v350_v59 }
 0x1cd   :  { %v387_v62 = vpop.xlane.xlu1 %386  ;;  %v371_v63 = vpop.xlane.xlu0 %370 }
 0x1ce   :  { %v409_v0 = vmax.f32 %v361_v60, %v387_v62  ;;  %v401_v1 = vmax.f32 %v353_v61, %v371_v63 }
 0x1d0   :  { %426 = vst.msk [vmem:[%s1210_s2 + $0x48] sm:$0xff] %vm43_vm0, %v409_v0  ;;  %418 = vst.msk [vmem:[%s1210_s2 + $0x8] sm:$0xff] %vm43_vm0, %v401_v1 }
 0x1d1   :  { %614 = vst.msk [vmem:[%s1210_s2 + $0x48] sm:$0xff] %vm43_vm0, %v838_v3  ;;  %606 = vst.msk [vmem:[%s1210_s2 + $0x8] sm:$0xff] %vm43_vm0, %v838_v3  ;;  %v369_v4 = vpop.xlane.xlu0 %368  ;;  %v375_v5 = vpop.xlane.xlu1 %374 }
 0x1d2   :  { %v400_v6 = vmax.f32 %v352_v2, %v369_v4  ;;  %v403_v7 = vmax.f32 %v355_v44, %v375_v5 }
 0x1d4   :  { %417 = vst.msk [vmem:[%s1210_s2] sm:$0xff] %vm43_vm0, %v400_v6  ;;  %420 = vst.msk [vmem:[%s1210_s2 + $0x18] sm:$0xff] %vm43_vm0, %v403_v7 }
 0x1d5   :  { %608 = vst.msk [vmem:[%s1210_s2 + $0x18] sm:$0xff] %vm43_vm0, %v838_v3  ;;  %v385_v10 = vpop.xlane.xlu0 %384  ;;  %v391_v11 = vpop.xlane.xlu1 %390 }
 0x1d6   :  { %v408_v12 = vmax.f32 %v360_v8, %v385_v10  ;;  %v411_v13 = vmax.f32 %v363_v9, %v391_v11 }
 0x1d8   :  { %425 = vst.msk [vmem:[%s1210_s2 + $0x40] sm:$0xff] %vm43_vm0, %v408_v12  ;;  %428 = vst.msk [vmem:[%s1210_s2 + $0x58] sm:$0xff] %vm43_vm0, %v411_v13 }
 0x1d9   :  { %613 = vst.msk [vmem:[%s1210_s2 + $0x40] sm:$0xff] %vm43_vm0, %v838_v3  ;;  %616 = vst.msk [vmem:[%s1210_s2 + $0x58] sm:$0xff] %vm43_vm0, %v838_v3  ;;  %v389_v16 = vpop.xlane.xlu0 %388  ;;  %v373_v17 = vpop.xlane.xlu1 %372 }
 0x1da   :  { %v410_v18 = vmax.f32 %v362_v14, %v389_v16  ;;  %v402_v19 = vmax.f32 %v354_v15, %v373_v17 }
 0x1db   :  { %v572_v20 = vld [vmem:[%s1210_s2] sm:$0xff] }
 0x1dc   :  { %605 = vst.msk [vmem:[%s1210_s2] sm:$0xff] %vm43_vm0, %v572_v20  ;;  %427 = vst.msk [vmem:[%s1210_s2 + $0x50] sm:$0xff] %vm43_vm0, %v410_v18 }
 0x1dd   :  { %419 = vst.msk [vmem:[%s1210_s2 + $0x10] sm:$0xff] %vm43_vm0, %v402_v19  ;;  %615 = vst.msk [vmem:[%s1210_s2 + $0x50] sm:$0xff] %vm43_vm0, %v838_v3  ;;  %v379_v23 = vpop.xlane.xlu1 %378  ;;  %v377_v24 = vpop.xlane.xlu0 %376 }
 0x1de   :  { %607 = vst.msk [vmem:[%s1210_s2 + $0x10] sm:$0xff] %vm43_vm0, %v838_v3  ;;  %v405_v25 = vmax.f32 %v357_v21, %v379_v23  ;;  %v404_v26 = vmax.f32 %v356_v22, %v377_v24 }
 0x1e0   :  { %422 = vst.msk [vmem:[%s1210_s2 + $0x28] sm:$0xff] %vm43_vm0, %v405_v25  ;;  %421 = vst.msk [vmem:[%s1210_s2 + $0x20] sm:$0xff] %vm43_vm0, %v404_v26 }
 0x1e1   :  { %610 = vst.msk [vmem:[%s1210_s2 + $0x28] sm:$0xff] %vm43_vm0, %v838_v3  ;;  %609 = vst.msk [vmem:[%s1210_s2 + $0x20] sm:$0xff] %vm43_vm0, %v838_v3  ;;  %v395_v29 = vpop.xlane.xlu1 %394  ;;  %v393_v30 = vpop.xlane.xlu0 %392 }
 0x1e2   :  { %v413_v31 = vmax.f32 %v365_v27, %v395_v29  ;;  %v412_v32 = vmax.f32 %v364_v28, %v393_v30 }
 0x1e4   :  { %430 = vst.msk [vmem:[%s1210_s2 + $0x68] sm:$0xff] %vm43_vm0, %v413_v31  ;;  %429 = vst.msk [vmem:[%s1210_s2 + $0x60] sm:$0xff] %vm43_vm0, %v412_v32 }
 0x1e5   :  { %618 = vst.msk [vmem:[%s1210_s2 + $0x68] sm:$0xff] %vm43_vm0, %v838_v3  ;;  %617 = vst.msk [vmem:[%s1210_s2 + $0x60] sm:$0xff] %vm43_vm0, %v838_v3  ;;  %v383_v35 = vpop.xlane.xlu1 %382  ;;  %v381_v36 = vpop.xlane.xlu0 %380 }
 0x1e6   :  { %v407_v37 = vmax.f32 %v359_v33, %v383_v35  ;;  %v406_v38 = vmax.f32 %v358_v34, %v381_v36 }
 0x1e8   :  { %424 = vst.msk [vmem:[%s1210_s2 + $0x38] sm:$0xff] %vm43_vm0, %v407_v37  ;;  %423 = vst.msk [vmem:[%s1210_s2 + $0x30] sm:$0xff] %vm43_vm0, %v406_v38 }
 0x1e9   :  { %612 = vst.msk [vmem:[%s1210_s2 + $0x38] sm:$0xff] %vm43_vm0, %v838_v3  ;;  %611 = vst.msk [vmem:[%s1210_s2 + $0x30] sm:$0xff] %vm43_vm0, %v838_v3  ;;  %v399_v41 = vpop.xlane.xlu1 %398  ;;  %v397_v43 = vpop.xlane.xlu0 %396 }
 0x1ea   :  { %v415_v45 = vmax.f32 %v367_v39, %v399_v41  ;;  %v414_v46 = vmax.f32 %v366_v40, %v397_v43 }
 0x1ec   :  { %432 = vst.msk [vmem:[%s1210_s2 + $0x78] sm:$0xff] %vm43_vm0, %v415_v45  ;;  %431 = vst.msk [vmem:[%s1210_s2 + $0x70] sm:$0xff] %vm43_vm0, %v414_v46 }
 0x1ed   :  { %620 = vst.msk [vmem:[%s1210_s2 + $0x78] sm:$0xff] %vm43_vm0, %v838_v3  ;;  %619 = vst.msk [vmem:[%s1210_s2 + $0x70] sm:$0xff] %vm43_vm0, %v838_v3 }
 0x1ee   :  { %625 = vsyncpa [#allocation3], 1 }
 0x1ef   :  { %626 = vsyncpa [#allocation5], 1 }

</bundles_post_ra>
